<compile_context>
chip_gen: v6e
topology: v6e:2x2x1
jax: 0.10.0
libtpu: 0.0.40
codegen_flags: <defaults>
</compile_context>

<pallas_src>
from functools import partial

import jax
import jax.numpy as jnp
from jax.experimental import pallas as pl
from jax.experimental.pallas import tpu as pltpu

EPS = 0.1  # module default label-smoothing epsilon


def _round_up(x, m):
    return ((x + m - 1) // m) * m


def _lsce_kernel(logits_ref, partial_ref, *, n_rows, block_rows):
    i = pl.program_id(0)
    x = logits_ref[...]                                    # (TM, C), native dtype

    # Valid-row mask for the (possibly padded) tail tile.
    row = jax.lax.broadcasted_iota(jnp.int32, (block_rows, 1), 0)
    valid = (i * block_rows + row) < n_rows                # (TM, 1) bool

    # Per-row reductions. max / subtract stay in the native dtype (bf16 VPU on
    # v6e/v7x); exp/log and the accumulations are f32 for accuracy.
    m = jnp.max(x, axis=-1, keepdims=True)                                    # (TM, 1)
    e = jnp.exp((x - m).astype(jnp.float32))                                  # (TM, C) f32
    lse = m.astype(jnp.float32) + jnp.log(jnp.sum(e, axis=-1, keepdims=True))  # (TM, 1)
    sum_x = jnp.sum(x, axis=-1, keepdims=True, dtype=jnp.float32)             # (TM, 1)

    zero = jnp.zeros_like(lse)
    partial_ref[0, 0] = jnp.sum(jnp.where(valid, lse, zero))
    partial_ref[0, 1] = jnp.sum(jnp.where(valid, sum_x, zero))


def _sublane(dtype):
    # bf16 packs 16 rows per vreg sublane group; f32 packs 8.
    return 16 if jnp.dtype(dtype).itemsize == 2 else 8


def _choose_block_rows(n, c, dtype, max_block_bytes=2 * 1024 * 1024):
    sub = _sublane(dtype)
    # Budget with f32 itemsize regardless of the input dtype: the kernel materializes
    # tile-sized f32 temporaries (exp result, f32-accumulated sums).
    tm = max(sub, min(1024, max_block_bytes // max(1, c * 4)))
    # Prefer >= 4 grid steps so BlockSpec double-buffering overlaps DMA with compute
    # and the "parallel" grid axis gives each TensorCore >= 2 tiles (v7x megacore).
    tm = min(tm, max(sub, _round_up((n + 3) // 4, sub)))
    tm = max(sub, (tm // sub) * sub)
    tm = min(tm, _round_up(n, sub))
    return tm


def label_smoothing_cross_entropy(logits, target, eps=EPS, block_rows=None):
    """logits: (N, C) float (f32 or bf16); target: (N,) int. Returns scalar f32 loss."""
    n, c = logits.shape
    sub = _sublane(logits.dtype)
    if block_rows is None:
        tm = _choose_block_rows(n, c, logits.dtype)
    else:
        tm = max(sub, (min(block_rows, _round_up(n, sub)) // sub) * sub)
    num_tiles = pl.cdiv(n, tm)

    kernel = partial(_lsce_kernel, n_rows=n, block_rows=tm)

    # Explicit scoped-VMEM budget: double-buffered input block + tile-sized f32
    # temporaries + margin, clamped into [16 MiB, 32 MiB] (safe on all generations).
    in_blk_bytes = tm * c * jnp.dtype(logits.dtype).itemsize
    f32_blk_bytes = tm * c * 4
    vmem_limit = int(min(32 << 20,
                         max(16 << 20, 2 * in_blk_bytes + 4 * f32_blk_bytes + (2 << 20))))

    partials = pl.pallas_call(
        kernel,
        grid=(num_tiles,),
        in_specs=[pl.BlockSpec((tm, c), lambda i: (i, 0))],      # logits row tile
        out_specs=pl.BlockSpec((1, 2), lambda i: (i, 0), memory_space=pltpu.SMEM),
        out_shape=jax.ShapeDtypeStruct((num_tiles, 2), jnp.float32),
        compiler_params=pltpu.CompilerParams(
            dimension_semantics=("parallel",),
            vmem_limit_bytes=vmem_limit),
    )(logits)

    s_lse = jnp.sum(partials[:, 0])
    s_x = jnp.sum(partials[:, 1])

    # x[i, target[i]] gathered outside the streamed kernel (N tiny values), per review.
    picked = jnp.take_along_axis(logits, target.astype(jnp.int32)[:, None], axis=-1)
    s_picked = jnp.sum(picked.astype(jnp.float32))

    loss = (c * s_lse - s_x) / n          # mean_i( -sum_j log_preds[i, j] )
    nll = (s_lse - s_picked) / n          # mean_i( -log_preds[i, target[i]] )
    return eps * (loss / c) + (1.0 - eps) * nll


def _reference(logits, target, eps=EPS):
    logp = jax.nn.log_softmax(logits.astype(jnp.float32), axis=-1)
    c = logits.shape[-1]
    loss = jnp.mean(-jnp.sum(logp, axis=-1))
    nll = jnp.mean(-logp[jnp.arange(logits.shape[0]), target])
    return eps * (loss / c) + (1.0 - eps) * nll


if __name__ == "__main__":
    key = jax.random.PRNGKey(0)
    k1, k2, k3, k4, k5, k6, k7, k8 = jax.random.split(key, 8)

    # Case 1: f32 logits, batch=8, classes=32 (single tile).
    n1, c1 = 8, 32
    logits1 = jax.random.normal(k1, (n1, c1), dtype=jnp.float32)
    target1 = jax.random.randint(k2, (n1,), 0, c1, dtype=jnp.int32)
    out1 = jax.block_until_ready(label_smoothing_cross_entropy(logits1, target1))
    ref1 = _reference(logits1, target1)
    assert jnp.allclose(out1, ref1, atol=1e-5, rtol=1e-5), (out1, ref1)

    # Case 2: batch not a multiple of the row tile -> 2 grid steps + tail-row masking.
    n2, c2 = 13, 32
    logits2 = jax.random.normal(k3, (n2, c2), dtype=jnp.float32)
    target2 = jax.random.randint(k4, (n2,), 0, c2, dtype=jnp.int32)
    out2 = jax.block_until_ready(
        label_smoothing_cross_entropy(logits2, target2, block_rows=8))
    ref2 = _reference(logits2, target2)
    assert jnp.allclose(out2, ref2, atol=1e-5, rtol=1e-5), (out2, ref2)

    # Case 3: bf16 logits streamed in native dtype (max / subtract on the bf16 VPU,
    # exp and sums in f32). Looser tolerance: the f32-upcast reference differs by
    # bf16-subtract rounding (~1e-3), which is within normal bf16 expectations.
    n3, c3 = 12, 32
    logits3 = jax.random.normal(k5, (n3, c3), dtype=jnp.float32).astype(jnp.bfloat16)
    target3 = jax.random.randint(k6, (n3,), 0, c3, dtype=jnp.int32)
    out3 = jax.block_until_ready(label_smoothing_cross_entropy(logits3, target3))
    ref3 = _reference(logits3, target3)
    assert jnp.allclose(out3, ref3, atol=1e-2, rtol=1e-2), (out3, ref3)

    # Case 4: auto-chosen tile with multiple grid steps, lane-aligned C=128.
    n4, c4 = 40, 128
    logits4 = jax.random.normal(k7, (n4, c4), dtype=jnp.float32)
    target4 = jax.random.randint(k8, (n4,), 0, c4, dtype=jnp.int32)
    out4 = jax.block_until_ready(label_smoothing_cross_entropy(logits4, target4))
    ref4 = _reference(logits4, target4)
    assert jnp.allclose(out4, ref4, atol=1e-5, rtol=1e-5), (out4, ref4)

    print("KERNEL_OK")
</pallas_src>

<mosaic_0001>
module attributes {stable_mosaic.version = 11 : i64} {
  func.func @_lsce_kernel(%arg0: i32, %arg1: memref<8x32xf32, #tpu.memory_space<vmem>>, %arg2: memref<1x2xf32, #tpu.memory_space<smem>>) attributes {dimension_semantics = [#tpu.dimension_semantics<parallel>], iteration_bounds = array<i64: 1>, scalar_prefetch = 0 : i64, scratch_operands = 0 : i64, tpu.core_type = #tpu.core_type<tc>, window_params = [{transform_indices = @transform_0, window_bounds = array<i64: 8, 32>}, {transform_indices = @transform_1, window_bounds = array<i64: 1, 2>}]} {
    %c0 = arith.constant 0 : index
    %c0_0 = arith.constant 0 : index
    %0 = vector.load %arg1[%c0, %c0_0] : memref<8x32xf32, #tpu.memory_space<vmem>>, vector<8x32xf32>
    %1 = tpu.iota {dimensions = array<i32: 0>} : vector<8x1xi32>
    %c8_i32 = arith.constant 8 : i32
    %2 = arith.muli %arg0, %c8_i32 : i32
    %3 = vector.broadcast %2 : i32 to vector<8x1xi32>
    %4 = arith.addi %3, %1 : vector<8x1xi32>
    %c8_i32_1 = arith.constant 8 : i32
    %5 = vector.broadcast %c8_i32_1 : i32 to vector<8x1xi32>
    %6 = arith.cmpi slt, %4, %5 : vector<8x1xi32>
    %cst = arith.constant dense<0xFF800000> : vector<8xf32>
    %7 = vector.multi_reduction <maximumf>, %0, %cst [1] : vector<8x32xf32> to vector<8xf32>
    %8 = vector.shape_cast %7 : vector<8xf32> to vector<8x1xf32>
    %9 = vector.broadcast %8 : vector<8x1xf32> to vector<8x32xf32>
    %10 = arith.subf %0, %9 : vector<8x32xf32>
    %11 = math.exp %10 : vector<8x32xf32>
    %cst_2 = arith.constant dense<0.000000e+00> : vector<8xf32>
    %12 = vector.multi_reduction <add>, %11, %cst_2 [1] : vector<8x32xf32> to vector<8xf32>
    %13 = vector.shape_cast %12 : vector<8xf32> to vector<8x1xf32>
    %14 = math.log %13 : vector<8x1xf32>
    %15 = arith.addf %8, %14 : vector<8x1xf32>
    %cst_3 = arith.constant dense<0.000000e+00> : vector<8xf32>
    %16 = vector.multi_reduction <add>, %0, %cst_3 [1] : vector<8x32xf32> to vector<8xf32>
    %17 = vector.shape_cast %16 : vector<8xf32> to vector<8x1xf32>
    %cst_4 = arith.constant 0.000000e+00 : f32
    %18 = vector.broadcast %cst_4 : f32 to vector<8x1xf32>
    %19 = arith.select %6, %15, %18 : vector<8x1xi1>, vector<8x1xf32>
    %20 = vector.shape_cast %19 : vector<8x1xf32> to vector<1x8x1xf32>
    %cst_5 = arith.constant dense<0.000000e+00> : vector<1xf32>
    %21 = vector.multi_reduction <add>, %20, %cst_5 [1, 2] : vector<1x8x1xf32> to vector<1xf32>
    %22 = vector.shape_cast %21 : vector<1xf32> to vector<1x1x1xf32>
    %23 = vector.extract %22[0, 0, 0] : f32 from vector<1x1x1xf32>
    %c0_6 = arith.constant 0 : index
    %c0_7 = arith.constant 0 : index
    %24 = memref.load %arg2[%c0_6, %c0_7] : memref<1x2xf32, #tpu.memory_space<smem>>
    memref.store %23, %arg2[%c0_6, %c0_7] : memref<1x2xf32, #tpu.memory_space<smem>>
    %25 = arith.select %6, %17, %18 : vector<8x1xi1>, vector<8x1xf32>
    %26 = vector.shape_cast %25 : vector<8x1xf32> to vector<1x8x1xf32>
    %cst_8 = arith.constant dense<0.000000e+00> : vector<1xf32>
    %27 = vector.multi_reduction <add>, %26, %cst_8 [1, 2] : vector<1x8x1xf32> to vector<1xf32>
    %28 = vector.shape_cast %27 : vector<1xf32> to vector<1x1x1xf32>
    %29 = vector.extract %28[0, 0, 0] : f32 from vector<1x1x1xf32>
    %c0_9 = arith.constant 0 : index
    %c1 = arith.constant 1 : index
    %30 = memref.load %arg2[%c0_9, %c1] : memref<1x2xf32, #tpu.memory_space<smem>>
    memref.store %29, %arg2[%c0_9, %c1] : memref<1x2xf32, #tpu.memory_space<smem>>
    return
  }
  func.func @transform_0(%arg0: i32) -> (i32, i32) {
    %c0_i32 = arith.constant 0 : i32
    %c0_i32_0 = arith.constant 0 : i32
    return %arg0, %c0_i32 : i32, i32
  }
  func.func @transform_1(%arg0: i32) -> (i32, i32) {
    %c0_i32 = arith.constant 0 : i32
    %c0_i32_0 = arith.constant 0 : i32
    return %arg0, %c0_i32 : i32, i32
  }
}

</mosaic_0001>

<bundles_post_ra>
// kernel: tpu_custom_call.1
= control target key start
LH: loop header
LB: loop body
LE: loop exit
PB: predicated region body
PF: predicated region fallthrough
CT: control target
= control target key end

     0   :  { %6 = vsyncpa [#allocation3], 0  ;;  %s145_s0 = inlined_call_operand.hbm [shape: f32[8,32], index: 0, kind: input, shape index: {}]   ;;  %s146_s1 = inlined_call_operand.hbm [shape: f32[1,2], index: 1, kind: output, shape index: {}]  }
   0x1   :  { %7 = vsyncpa [#allocation4], 0  ;;  %s127_s6 = smov [#allocation2]  }
   0x2   :  { %s14_s7 = sshll.u32 %s127_s6, 4  ;;  %s15_s7 = int_to_ptr.vmem [resolvable:$true] %s14_s7 }
   0x3   :  { %s103_s8 = scalar_lea.vmem %s15_s7, 128  ;;  %p108_p1 = scmp.lt.s32.totalorder %s15_s7, %s15_s7 }
   0x4   :  { %p104_p0 = scmp.ne.s32.totalorder %s15_s7, %s103_s8  ;;  %p109_p2 = scmp.lt.s32.totalorder %s103_s8, %s103_s8 }
   0x6   :  { %p110_p3 = por %p109_p2, %p108_p1 }
   0x8   :  { %p111_p4 = pnand %p110_p3, %p104_p0 }
   0xa   :  { %114 = shalt.err (!%p111_p4)
}
   0xb   :  { %17 = dma.hbm_to_vmem [thread:$0]  %s145_s0, 128, %s15_s7, [#allocation3]  }
   0xc   :  { %123 = dma.done.wait [#allocation3], 128  }
   0xd   :  { %124 = vsyncadd [#allocation3], 4294967168  ;;  %vm28_vm0 = vcmask 261120   ;;  %v21_v0 = vld [vmem:[#allocation2] sm:$0xff]  ;;  %vm45_vm1 = vcmask 7168   ;;  %s128_s12 = smov [#allocation5]  }
   0xe   :  { %v29_v1 = vsel %vm28_vm0, %v21_v0, -inf  ;;  %v41_v2 = vsel %vm28_vm0, %v21_v0, 0.0 }
   0xf   :  { %30 = vmax.xlane.f32.xlu0 %v29_v1  ;;  %42 = vadd.xlane.f32.xlu1 %v41_v2 }
  0x98   :  { %v31_v3 = vpop.xlane.xlu0 %30  ;;  %v43_v8 = vpop.xlane.xlu1 %42 }
  0x99   :  { %v32_v4 = vsub.f32 %v21_v0, %v31_v3  ;;  %v59_v9 = vsel %vm45_vm1, %v43_v8, 0.0 }
  0x9b   :  { %v33_v5 = vmul.f32 1.442695, %v32_v4 }
  0x9d   :  { %91 = vpow2.f32 %v33_v5 }
  0xaa   :  { %v92_v6 = vpop.eup %91 }
  0xab   :  { %v35_v7 = vsel %vm28_vm0, %v92_v6, 0.0 }
  0xac   :  { %36 = vadd.xlane.f32.xlu0 %v35_v7 }
  0xb0   :  { %60 = vadd.xlane.f32.xlu0 %v59_v9 }
 0x135   :  { %v37_v10 = vpop.xlane.xlu0 %36 }
 0x136   :  { %93 = vlog2.f32 %v37_v10 }
 0x139   :  { %v61_v15 = vpop.xlane.xlu0 %60 }
 0x13a   :  { %v62_v16 = vrot.slane %v61_v15, 4 }
 0x13c   :  { %v63_v17 = vadd.f32 %v62_v16, %v61_v15 }
 0x13e   :  { %v64_v18 = vrot.slane %v63_v17, 2 }
 0x140   :  { %v65_v22 = vadd.f32 %v64_v18, %v63_v17 }
 0x142   :  { %v66_v25 = vrot.slane %v65_v22, 1 }
 0x143   :  { %v94_v11 = vpop.eup %93 }
 0x144   :  { %v39_v12 = vmul.f32 0.6931472, %v94_v11  ;;  %v67_v28 = vadd.f32 %v66_v25, %v65_v22 }
 0x146   :  { %v40_v13 = vadd.f32 %v39_v12, %v31_v3 }
 0x148   :  { %v46_v14 = vsel %vm45_vm1, %v40_v13, 0.0 }
 0x149   :  { %47 = vadd.xlane.f32.xlu1 %v46_v14 }
 0x1d2   :  { %v48_v19 = vpop.xlane.xlu1 %47 }
 0x1d3   :  { %v49_v20 = vrot.slane %v48_v19, 4 }
 0x1d5   :  { %v50_v21 = vadd.f32 %v49_v20, %v48_v19 }
 0x1d7   :  { %v51_v23 = vrot.slane %v50_v21, 2 }
 0x1d9   :  { %v52_v24 = vadd.f32 %v51_v23, %v50_v21 }
 0x1db   :  { %v53_v26 = vrot.slane %v52_v24, 1 }
 0x1dd   :  { %v54_v27 = vadd.f32 %v53_v26, %v52_v24 }
 0x1df   :  { %85 = vpush %v54_v27 }
 0x1e0   :  { %87 = vpush %v67_v28 }
 0x210   :  { %s86_s0 = spop %85 }
 0x211   :  { %57 = sst [smem:[#allocation5]] %s86_s0  ;;  %s88_s11 = spop %87 }
 0x212   :  { %70 = sst [smem:[#allocation5 + $0x1]] %s88_s11 }
 0x213   :  { %78 = dma.smem_to_hbm %s128_s12, 16, %s146_s1, [#allocation4]  }
 0x214   :  { %125 = dma.done.wait [#allocation4], 16  }
 0x215   :  { %126 = vsyncadd [#allocation4], 4294967280 }
 0x216   :  { %82 = sfence }
 0x217   :  { %83 = vsyncpa [#allocation3], 1 }
 0x218   :  { %84 = vsyncpa [#allocation4], 1 }

</bundles_post_ra>
